<compile_context>
chip_gen: v6e
topology: v6e:2x2x1
jax: 0.10.0
libtpu: 0.0.40
codegen_flags: <defaults>
</compile_context>

<pallas_src>
import math

import jax
import jax.numpy as jnp
from jax.experimental import pallas as pl
from jax.experimental.pallas import tpu as pltpu

_LANE = 128


def _cdiv(a, b):
    return -(-a // b)


def _round_up(x, m):
    return _cdiv(x, m) * m


def _layerscale_kernel(x_ref, gamma_ref, o_ref):
    # x_ref: (tm, tD) row tile; gamma_ref: (1, tD) fp32 scale broadcast over
    # rows.  Multiply in the promoted dtype, cast once on the store.
    o_ref[...] = (x_ref[...] * gamma_ref[...]).astype(o_ref.dtype)


def _chip_params():
    """Returns (per_buffer_tile_budget_bytes, vmem_limit_cap_bytes)."""
    try:
        vmem_cap = int(pltpu.get_tpu_info().vmem_capacity_bytes)
    except Exception:
        vmem_cap = 128 * 2**20
    if vmem_cap <= 64 * 2**20:
        # v7x (64 MiB / TC): 8 MiB tiles keep the ~0.35us per-grid-step
        # overhead at ~6% of each step's DMA time at 3.2 TB/s, but never
        # request the full physical VMEM (leave headroom for compiler
        # scratch / double-buffer bookkeeping).
        return 8 * 2**20, 48 * 2**20
    # v5e / v6e: 128 MiB VMEM, 8 MiB tiles are free; cap request at 64 MiB.
    return 8 * 2**20, 64 * 2**20


def _layer_scale_2d(xw, gw, out_dtype, *, inplace=False):
    """One streaming pallas_call over a 2-D (rows, lanes) working view.

    xw: (Mw, Dw) data, gw: (1, Dw) fp32 per-lane scale.
    """
    Mw, Dw = xw.shape
    in_isz = jnp.dtype(xw.dtype).itemsize
    out_isz = jnp.dtype(out_dtype).itemsize
    g_isz = jnp.dtype(gw.dtype).itemsize
    max_isz = max(in_isz, out_isz)
    # Sublane packing of the narrowest participating dtype (8 f32/16 bf16/32 i8).
    row_align = max(8, 32 // min(in_isz, out_isz))

    budget, vmem_cap_limit = _chip_params()

    # Lane-axis tiling: prefer a full-width row stripe (fully contiguous HBM
    # DMA).  Only split the lane axis if even one sublane-aligned stripe would
    # not fit the capped VMEM request when double-buffered (very wide rows).
    stripe_bytes = row_align * Dw * max_isz
    full_width_cap = max(budget, (vmem_cap_limit - 8 * 2**20) // 4)
    if Dw % _LANE == 0 and stripe_bytes > full_width_cap:
        tD = min(Dw, max(_LANE, (budget // (row_align * max_isz)) // _LANE * _LANE))
    else:
        tD = Dw  # block dim equal to the full array dim is always legal

    max_tm = max(row_align, (budget // (tD * max_isz)) // row_align * row_align)
    tm = min(_round_up(Mw, row_align), max_tm)

    # Megacore (v7x has 2 TensorCores; "parallel" shards the grid): make sure
    # the row axis has at least two tiles whenever there is enough data.
    if Mw * Dw * max_isz > (1 << 20):
        tm = min(tm, max(row_align, _round_up(_cdiv(Mw, 2), row_align)))

    grid = (_cdiv(Mw, tm), _cdiv(Dw, tD))

    # 2x double-buffered input + 2x double-buffered output + gamma + headroom,
    # capped below the usable per-generation scoped VMEM.
    tile_bytes = tm * tD * (in_isz + out_isz)
    vmem_limit = int(min(vmem_cap_limit,
                         max(32 * 2**20, (5 * tile_bytes) // 2 + tD * g_isz)))

    cost = pl.CostEstimate(
        flops=Mw * Dw,
        transcendentals=0,
        bytes_accessed=Mw * Dw * (in_isz + out_isz) + Dw * g_isz,
    )

    kwargs = {}
    if inplace and jnp.dtype(xw.dtype) == jnp.dtype(out_dtype):
        # Matches PyTorch's x.mul_(gamma): reuse x's buffer for the output.
        kwargs["input_output_aliases"] = {0: 0}

    return pl.pallas_call(
        _layerscale_kernel,
        out_shape=jax.ShapeDtypeStruct((Mw, Dw), out_dtype),
        grid_spec=pltpu.PrefetchScalarGridSpec(
            num_scalar_prefetch=0,
            grid=grid,
            in_specs=[
                pl.BlockSpec((tm, tD), lambda i, j: (i, j)),
                # Constant block index along the row axis -> gamma stays
                # VMEM-resident; single-buffered (double buffering a resident
                # block is wasted VMEM).
                pl.BlockSpec((1, tD), lambda i, j: (0, j),
                             pipeline_mode=pl.Buffered(1)),
            ],
            out_specs=pl.BlockSpec((tm, tD), lambda i, j: (i, j)),
        ),
        compiler_params=pltpu.CompilerParams(
            dimension_semantics=("parallel", "parallel"),
            vmem_limit_bytes=vmem_limit,
        ),
        cost_estimate=cost,
        **kwargs,
    )(xw, gw)


def layer_scale(x, gamma, *, inplace=False):
    """Computes x * gamma with gamma of shape (D,), broadcast over leading dims."""
    orig_shape = x.shape
    D = orig_shape[-1]
    assert gamma.shape == (D,)

    # Keep gamma fp32 inside the kernel; output dtype follows PyTorch type
    # promotion (bf16 x * fp32 gamma -> fp32, int x never truncates the scale).
    gamma = gamma.astype(jnp.float32)
    out_dtype = jnp.promote_types(x.dtype, gamma.dtype)

    if x.size == 0:
        return (x.astype(out_dtype) * gamma).reshape(orig_shape)

    x2 = x.reshape(-1, D)  # free row-major view reshape
    M = x2.shape[0]

    if D % _LANE == 0:
        out2 = _layer_scale_2d(x2, gamma.reshape(1, D), out_dtype, inplace=inplace)
    else:
        # Lane-dense fold: k rows folded together so the last dim becomes
        # lcm(D, 128) -> unmasked lane-dense stores for the bulk of the data.
        k = math.lcm(D, _LANE) // D
        M_bulk = (M // k) * k
        if M_bulk == M:
            xw = x2.reshape(M // k, D * k)
            gw = jnp.tile(gamma, k).reshape(1, D * k)
            out2 = _layer_scale_2d(xw, gw, out_dtype, inplace=inplace)
        elif M_bulk == 0:
            # Fewer than k (< 128) rows total: single tiny unaligned call.
            out2 = _layer_scale_2d(x2, gamma.reshape(1, D), out_dtype,
                                   inplace=inplace)
        else:
            # Split: bulk rows use the folded lane-dense layout, the < k-row
            # tail uses a second tiny call; the bulk never sees masked
            # sub-128-lane stores.
            xb = x2[:M_bulk].reshape(M_bulk // k, D * k)
            gb = jnp.tile(gamma, k).reshape(1, D * k)
            ob = _layer_scale_2d(xb, gb, out_dtype,
                                 inplace=inplace).reshape(M_bulk, D)
            ot = _layer_scale_2d(x2[M_bulk:], gamma.reshape(1, D), out_dtype,
                                 inplace=inplace)
            out2 = jnp.concatenate([ob, ot], axis=0)

    return out2.reshape(orig_shape)


class LayerScale:
    """JAX/Pallas equivalent of the PyTorch LayerScale module."""

    def __init__(self, dim, init_values=1e-05, inplace=False):
        # `inplace` maps to input_output_aliases (buffer reuse); the returned
        # value is identical either way.
        self.inplace = inplace
        self.gamma = init_values * jnp.ones((dim,), dtype=jnp.float32)

    def __call__(self, x):
        return layer_scale(x, self.gamma, inplace=self.inplace)


if __name__ == "__main__":
    key = jax.random.PRNGKey(0)

    # (batch, seq, hidden) channel-last, as used inside the transformer block.
    B, N, D = 2, 8, 32
    x = jax.random.normal(key, (B, N, D), dtype=jnp.float32)
    module = LayerScale(dim=D, init_values=1e-05)
    out = jax.block_until_ready(module(x))
    ref = x * module.gamma
    assert out.shape == x.shape and out.dtype == ref.dtype
    assert jnp.allclose(out, ref, atol=1e-6, rtol=1e-6)

    # Lane-aligned path (D % 128 == 0).
    D2 = 256
    x2 = jax.random.normal(jax.random.PRNGKey(1), (3, 5, D2), dtype=jnp.float32)
    m2 = LayerScale(dim=D2, init_values=1e-05)
    out2 = jax.block_until_ready(m2(x2))
    assert jnp.allclose(out2, x2 * m2.gamma, atol=1e-6, rtol=1e-6)

    # Unaligned D with a row tail (exercises the bulk-fold + tiny-tail split).
    D3 = 32
    x3 = jax.random.normal(jax.random.PRNGKey(2), (3, 5, D3), dtype=jnp.float32)
    m3 = LayerScale(dim=D3, init_values=1e-05)
    out3 = jax.block_until_ready(m3(x3))
    assert jnp.allclose(out3, x3 * m3.gamma, atol=1e-6, rtol=1e-6)

    print("KERNEL_OK")
</pallas_src>

<mosaic_0001>
module attributes {stable_mosaic.version = 11 : i64} {
  func.func @_layerscale_kernel(%arg0: i32, %arg1: i32, %arg2: memref<8x128xf32, #tpu.memory_space<vmem>>, %arg3: memref<1x128xf32, #tpu.memory_space<vmem>>, %arg4: memref<8x128xf32, #tpu.memory_space<vmem>>) attributes {dimension_semantics = [#tpu.dimension_semantics<parallel>, #tpu.dimension_semantics<parallel>], iteration_bounds = array<i64: 1, 1>, scalar_prefetch = 0 : i64, scratch_operands = 0 : i64, tpu.core_type = #tpu.core_type<tc>, window_params = [{transform_indices = @transform_0, window_bounds = array<i64: 8, 128>}, {pipeline_mode = #tpu.pipeline_mode<synchronous>, transform_indices = @transform_1, window_bounds = array<i64: 1, 128>}, {transform_indices = @transform_2, window_bounds = array<i64: 8, 128>}]} {
    %c0 = arith.constant 0 : index
    %c0_0 = arith.constant 0 : index
    %0 = vector.load %arg2[%c0, %c0_0] : memref<8x128xf32, #tpu.memory_space<vmem>>, vector<8x128xf32>
    %c0_1 = arith.constant 0 : index
    %c0_2 = arith.constant 0 : index
    %1 = vector.load %arg3[%c0_1, %c0_2] : memref<1x128xf32, #tpu.memory_space<vmem>>, vector<1x128xf32>
    %2 = vector.broadcast %1 : vector<1x128xf32> to vector<8x128xf32>
    %3 = arith.mulf %0, %2 : vector<8x128xf32>
    %c0_3 = arith.constant 0 : index
    %c0_4 = arith.constant 0 : index
    %4 = vector.load %arg4[%c0_3, %c0_4] : memref<8x128xf32, #tpu.memory_space<vmem>>, vector<8x128xf32>
    tpu.vector_store %arg4[%c0_3, %c0_4], %3 {strides = array<i32>} : memref<8x128xf32, #tpu.memory_space<vmem>>, vector<8x128xf32>,
    return
  }
  func.func @transform_0(%arg0: i32, %arg1: i32) -> (i32, i32) {
    %c0_i32 = arith.constant 0 : i32
    return %arg0, %arg1 : i32, i32
  }
  func.func @transform_1(%arg0: i32, %arg1: i32) -> (i32, i32) {
    %c0_i32 = arith.constant 0 : i32
    %c0_i32_0 = arith.constant 0 : i32
    return %c0_i32, %arg1 : i32, i32
  }
  func.func @transform_2(%arg0: i32, %arg1: i32) -> (i32, i32) {
    %c0_i32 = arith.constant 0 : i32
    return %arg0, %arg1 : i32, i32
  }
}

</mosaic_0001>

<bundles_post_ra>
// kernel: tpu_custom_call.1
= control target key start
LH: loop header
LB: loop body
LE: loop exit
PB: predicated region body
PF: predicated region fallthrough
CT: control target
= control target key end

     0   :  { %7 = vsyncpa [#allocation3], 0  ;;  %s130_s0 = inlined_call_operand.hbm [shape: f32[4,128], index: 0, kind: input, shape index: {}]   ;;  %s131_s1 = inlined_call_operand.vmem [shape: f32[1,128], index: 1, kind: input, shape index: {}]   ;;  %s132_s2 = inlined_call_operand.hbm [shape: f32[4,128], index: 2, kind: output, shape index: {}]  }
   0x1   :  { %8 = vsyncpa [#allocation4], 0 }
   0x2   :  { %13 = vsyncadd [#allocation3], 64  ;;  %s102_s9 = smov [#allocation2]  }
   0x3   :  { %s14_s10 = sshll.u32 %s102_s9, 4  ;;  %s15_s10 = int_to_ptr.vmem [resolvable:$true] %s14_s10 }
   0x4   :  { %s66_s11 = scalar_lea.vmem %s15_s10, 64  ;;  %s70_s12 = scalar_lea.vmem %s15_s10, 128 }
   0x5   :  { %p67_p0 = scmp.ne.s32.totalorder %s15_s10, %s66_s11  ;;  %p71_p1 = scmp.lt.s32.totalorder %s15_s10, %s15_s10 }
   0x6   :  { %p72_p2 = scmp.lt.s32.totalorder %s70_s12, %s66_s11 }
   0x8   :  { %p73_p3 = por %p72_p2, %p71_p1 }
   0xa   :  { %p74_p4 = pnand %p73_p3, %p67_p0 }
   0xc   :  { %77 = shalt.err (!%p74_p4)
}
   0xd   :  { %s103_s13 = smov 64   ;;  %s104_s14 = smov 4  }
   0xe   :  { %20 = dma.hbm_to_vmem [thread:$0]  %s130_s0, 64, %s15_s10, [#allocation3], %s103_s13, %s103_s13, %s104_s14  }
   0xf   :  { %98 = dma.done.wait [#allocation3], 128  }
  0x10   :  { %99 = vsyncadd [#allocation3], 4294967168  ;;  %v26_v0 = vld [vmem:[#allocation2] sm:$0xff] }
  0x11   :  { %v53_v1 = vld [vmem:[%s131_s1] ss:$0 sm:$0xff] }
  0x12   :  { %v34_v2 = vmul.f32 %v53_v1, %v26_v0 }
  0x14   :  { %35 = vst [vmem:[#allocation5] sm:$0xff] %v34_v2 }
  0x15   :  { %40 = vsyncadd [#allocation4], 64  ;;  %s105_s19 = smov [#allocation5]  }
  0x16   :  { %s41_s20 = sshll.u32 %s105_s19, 4  ;;  %s42_s20 = int_to_ptr.vmem [resolvable:$true] %s41_s20 }
  0x17   :  { %s78_s21 = scalar_lea.vmem %s42_s20, 64  ;;  %s82_s22 = scalar_lea.vmem %s42_s20, 128 }
  0x18   :  { %p79_p5 = scmp.ne.s32.totalorder %s42_s20, %s78_s21  ;;  %p83_p6 = scmp.lt.s32.totalorder %s42_s20, %s42_s20 }
  0x19   :  { %p84_p7 = scmp.lt.s32.totalorder %s82_s22, %s78_s21 }
  0x1b   :  { %p85_p8 = por %p84_p7, %p83_p6 }
  0x1d   :  { %p86_p9 = pnand %p85_p8, %p79_p5 }
  0x1f   :  { %89 = shalt.err (!%p86_p9)
}
  0x20   :  { %47 = dma.vmem_to_hbm [thread:$0]  %s42_s20, 64, %s132_s2, [#allocation4], %s103_s13, %s103_s13, %s104_s14  }
  0x21   :  { %100 = dma.done.wait [#allocation4], 128  }
  0x22   :  { %101 = vsyncadd [#allocation4], 4294967168 }
  0x23   :  { %51 = vsyncpa [#allocation3], 1 }
  0x24   :  { %52 = vsyncpa [#allocation4], 1 }

</bundles_post_ra>
